<compile_context>
chip_gen: v6e
topology: v6e:2x2x1
jax: 0.10.0
libtpu: 0.0.40
codegen_flags: <defaults>
</compile_context>

<pallas_src>
import functools
from typing import Dict, List

import jax
import jax.numpy as jnp
import numpy as np
from jax.experimental import pallas as pl
from jax.experimental.pallas import tpu as pltpu


def _round_up(x: int, m: int) -> int:
    return (x + m - 1) // m * m


def _cdiv(a: int, b: int) -> int:
    return -(-a // b)


# Conservative per-call budget for keeping the whole weight stack VMEM-resident
# (v7x: 64 MiB VMEM per TensorCore, and resident blocks may be double-buffered).
# Above this, weights are streamed per encoder block instead.
_RESIDENT_WEIGHT_BUDGET = 20 * 1024 * 1024


# ----------------------------- Pallas kernel --------------------------------
def _lp_seg_kernel(*refs, n_heads: int, H_head: int, scale: float,
                   apply_scale: bool, stream_w: bool, has_acc: bool):
    """grid = (token_tiles, nb_s).

    Axis 0 ("parallel") walks token tiles; axis 1 ("arbitrary") reduces over
    this segment's encoder blocks, accumulating directly into the resident f32
    output tile.  `acc` (previous segment's partial sums) seeds the tile."""
    if has_acc:
        x_ref, w1_ref, b1_ref, w2_ref, b2_ref, acc_ref, o_ref = refs
    else:
        x_ref, w1_ref, b1_ref, w2_ref, b2_ref, o_ref = refs
        acc_ref = None

    b = pl.program_id(1)               # encoder block within this segment
    nb_s = pl.num_programs(1)

    @pl.when(b == 0)
    def _init():
        if acc_ref is None:
            o_ref[...] = jnp.zeros_like(o_ref)
        else:
            o_ref[...] = acc_ref[...]  # carry accumulation from previous segment

    wi = 0 if stream_w else b          # streamed: block already selected by BlockSpec
    x = x_ref[...]                                                 # (tm, Din) bf16
    h = jnp.dot(x, w1_ref[wi], preferred_element_type=jnp.float32) + b1_ref[wi]
    # tanh-approx GELU (EUP-friendly); exact-erf nn.GELU differs by <1e-4 here.
    # TODO(synk): use approximate=False if exact erf lowering is required.
    h = jax.nn.gelu(h, approximate=True)
    hb = h.astype(w2_ref.dtype)

    parts = []
    for k in range(n_heads):           # static unrolled loop; block-diagonal W2
        hk = hb[:, k * H_head:(k + 1) * H_head]
        j2 = k if stream_w else b * n_heads + k
        yk = jnp.dot(hk, w2_ref[j2], preferred_element_type=jnp.float32) + b2_ref[j2]
        parts.append(yk)
    y = parts[0] if n_heads == 1 else jnp.concatenate(parts, axis=-1)

    if apply_scale and scale != 1.0:   # static python condition
        @pl.when(b == nb_s - 1)
        def _fin():
            o_ref[...] = (o_ref[...] + y) * scale   # fuse scale into last accumulate
        @pl.when(b < nb_s - 1)
        def _acc():
            o_ref[...] += y
    else:
        o_ref[...] += y


def lp_seg_call(x_all, p, acc, *, tm: int, n_heads: int, H_head: int, dpad: int,
                scale: float, apply_scale: bool):
    """x_all: [nb_s, Npad, Din] bf16; p: fused weights for one (branch, segment);
       acc: previous segment's [Npad, Dout_pad] f32 partial sums or None."""
    nb_s, Npad, Din = x_all.shape
    Hf = n_heads * H_head
    Dout_pad = n_heads * dpad
    num_tiles = Npad // tm

    w_bytes = (p["w1"].size + p["w2"].size) * 2 + (p["b1"].size + p["b2"].size) * 4
    stream_w = w_bytes > _RESIDENT_WEIGHT_BUDGET

    if stream_w:
        # streamed per encoder block (weight DMA hidden behind MXU work for big tm)
        w1_spec = pl.BlockSpec((1, Din, Hf), lambda i, b: (b, 0, 0))
        b1_spec = pl.BlockSpec((1, 1, Hf), lambda i, b: (b, 0, 0))
        w2_spec = pl.BlockSpec((n_heads, H_head, dpad), lambda i, b: (b, 0, 0))
        b2_spec = pl.BlockSpec((n_heads, 1, dpad), lambda i, b: (b, 0, 0))
        w_resident = 2 * ((Din * Hf + n_heads * H_head * dpad) * 2
                          + (Hf + n_heads * dpad) * 4)
    else:
        # whole segment weight stack VMEM-resident (constant index map: one DMA)
        w1_spec = pl.BlockSpec((nb_s, Din, Hf), lambda i, b: (0, 0, 0))
        b1_spec = pl.BlockSpec((nb_s, 1, Hf), lambda i, b: (0, 0, 0))
        w2_spec = pl.BlockSpec((nb_s * n_heads, H_head, dpad), lambda i, b: (0, 0, 0))
        b2_spec = pl.BlockSpec((nb_s * n_heads, 1, dpad), lambda i, b: (0, 0, 0))
        w_resident = 2 * w_bytes       # safety factor for possible double-buffering

    in_specs = [pl.BlockSpec((None, tm, Din), lambda i, b: (b, i, 0)),
                w1_spec, b1_spec, w2_spec, b2_spec]
    inputs = [x_all, p["w1"], p["b1"], p["w2"], p["b2"]]
    if acc is not None:
        # TODO(synk): alias to the output via input_output_aliases under jit with
        # donation to drop the extra output allocation.
        in_specs.append(pl.BlockSpec((tm, Dout_pad), lambda i, b: (i, 0)))
        inputs.append(acc)

    # rough VMEM budget: weights + double-buffered x tiles + resident out/acc
    # tiles + f32 intermediates (h, y).
    est = (w_resident + 2 * tm * Din * 2
           + 2 * tm * Dout_pad * 4 * (2 if acc is not None else 1)
           + tm * Hf * 6 + tm * Dout_pad * 8)
    vmem_limit = int(min(96 * 2**20, max(32 * 2**20, 1.5 * est)))

    kernel = functools.partial(_lp_seg_kernel, n_heads=n_heads, H_head=H_head,
                               scale=scale, apply_scale=apply_scale,
                               stream_w=stream_w, has_acc=acc is not None)
    return pl.pallas_call(
        kernel,
        out_shape=jax.ShapeDtypeStruct((Npad, Dout_pad), jnp.float32),
        grid_spec=pltpu.PrefetchScalarGridSpec(
            num_scalar_prefetch=0,
            grid=(num_tiles, nb_s),     # token tiles (parallel) x blocks (reduction)
            in_specs=in_specs,
            out_specs=pl.BlockSpec((tm, Dout_pad), lambda i, b: (i, 0)),
        ),
        compiler_params=pltpu.CompilerParams(
            dimension_semantics=("parallel", "arbitrary"),
            vmem_limit_bytes=vmem_limit),
    )(*inputs)


# --------------------------- parameter creation ------------------------------
def trunc_normal(key, shape, std=0.02):
    return std * jax.random.truncated_normal(key, -2.0, 2.0, shape, jnp.float32)


def make_lp_raw_params(key, input_dim: int, head_dims: Dict[str, int],
                       n_encoder_blocks: int, which_blocks: List[int],
                       hidden_dim: int, last_hidden_dim: int):
    """Raw per-(head, branch, block) Linear weights: y = scale*(GELU(x@W1+b1)@W2+b2)."""
    raw = {}
    for hname in sorted(head_dims.keys()):
        d_out = head_dims[hname]
        raw[hname] = {}
        for branch in ("cls", "patch"):
            blocks = []
            for bix in which_blocks:
                h_b = last_hidden_dim if bix == n_encoder_blocks - 1 else hidden_dim
                key, k1, k2 = jax.random.split(key, 3)
                w1 = trunc_normal(k1, (input_dim, h_b))
                b1 = jnp.zeros((h_b,), jnp.float32)
                w2 = trunc_normal(k2, (h_b, d_out))
                b2 = jnp.zeros((d_out,), jnp.float32)
                blocks.append((w1, b1, w2, b2))
            raw[hname][branch] = blocks
    return raw


def fuse_lp_params(raw, head_dims: Dict[str, int], which_blocks: List[int],
                   n_encoder_blocks: int, hidden_dim: int, last_hidden_dim: int):
    """Fuse all heads per (branch, hidden-width segment, block).

    W1 heads concatenated along the hidden axis (each head padded to H_head, a
    multiple of 128); W2 stored per head (block-diagonal exploited in kernel),
    each head's output padded to dpad (multiple of 128) -> lane-dense output."""
    head_names = sorted(head_dims.keys())
    n_heads = len(head_names)
    dpad = _round_up(max(head_dims.values()), 128)
    Din = int(np.asarray(raw[head_names[0]]["cls"][0][0]).shape[0])

    # group positions (index into which_blocks) by hidden width, in order.
    seg_map, seg_order = {}, []
    for j, bix in enumerate(which_blocks):
        h_b = last_hidden_dim if bix == n_encoder_blocks - 1 else hidden_dim
        if h_b not in seg_map:
            seg_map[h_b] = []
            seg_order.append(h_b)
        seg_map[h_b].append(j)

    segments = []
    for h_b in seg_order:
        positions = seg_map[h_b]
        H_head = _round_up(h_b, 128)
        Hf = n_heads * H_head
        nb_s = len(positions)
        seg = {"positions": positions, "H_head": H_head}
        for branch in ("patch", "cls"):
            W1 = np.zeros((nb_s, Din, Hf), np.float32)
            B1 = np.zeros((nb_s, 1, Hf), np.float32)
            W2 = np.zeros((nb_s * n_heads, H_head, dpad), np.float32)
            B2 = np.zeros((nb_s * n_heads, 1, dpad), np.float32)
            for s, j in enumerate(positions):
                for k, hname in enumerate(head_names):
                    w1, b1, w2, b2 = raw[hname][branch][j]
                    hb_ = int(w1.shape[1]); dk = int(w2.shape[1])
                    W1[s, :, k * H_head:k * H_head + hb_] = np.asarray(w1)
                    B1[s, 0, k * H_head:k * H_head + hb_] = np.asarray(b1)
                    W2[s * n_heads + k, :hb_, :dk] = np.asarray(w2)
                    B2[s * n_heads + k, 0, :dk] = np.asarray(b2)
            seg[branch] = dict(
                w1=jnp.asarray(W1, jnp.bfloat16),     # [nb_s, Din, Hf]
                b1=jnp.asarray(B1, jnp.float32),      # [nb_s, 1, Hf]
                w2=jnp.asarray(W2, jnp.bfloat16),     # [nb_s*n_heads, H_head, dpad]
                b2=jnp.asarray(B2, jnp.float32),      # [nb_s*n_heads, 1, dpad]
            )
        segments.append(seg)

    head_slices = {h: (k * dpad, k * dpad + head_dims[h])
                   for k, h in enumerate(head_names)}
    return dict(head_names=head_names, n_heads=n_heads, dpad=dpad, Din=Din,
                Dout_pad=n_heads * dpad, segments=segments, head_slices=head_slices)


# ------------------------------- LP forward ----------------------------------
def _run_branch(fused, branch, get_x, n_tokens, scale):
    segments = fused["segments"]
    n_heads = fused["n_heads"]
    dpad = fused["dpad"]
    tm = min(512, _round_up(max(n_tokens, 16), 16))   # multiple of 16 (bf16 packing)
    Npad = _cdiv(n_tokens, tm) * tm
    acc = None
    for si, seg in enumerate(segments):
        xs = [get_x(j) for j in seg["positions"]]
        x_all = jnp.stack(xs, 0).astype(jnp.bfloat16)          # [nb_s, n_tokens, Din]
        if Npad != n_tokens:
            x_all = jnp.pad(x_all, ((0, 0), (0, Npad - n_tokens), (0, 0)))
        acc = lp_seg_call(x_all, seg[branch], acc, tm=tm, n_heads=n_heads,
                          H_head=seg["H_head"], dpad=dpad, scale=scale,
                          apply_scale=(si == len(segments) - 1))
    return acc


def lp_forward(fused, x_cls, x_patch, which_blocks, scale: float = 1.0):
    Din = fused["Din"]
    B = x_cls[which_blocks[0] + 1].shape[0]
    P = x_patch[which_blocks[0] + 1].shape[1]
    Np = B * P

    out_patch = _run_branch(fused, "patch",
                            lambda j: x_patch[which_blocks[j] + 1].reshape(Np, Din),
                            Np, scale)
    out_cls = _run_branch(fused, "cls",
                          lambda j: x_cls[which_blocks[j] + 1],
                          B, scale)

    res = {}
    for hname, (c0, c1) in fused["head_slices"].items():
        res[hname] = {"patch": out_patch[:Np, c0:c1].reshape(B, P, c1 - c0),
                      "cls": out_cls[:B, c0:c1]}
    return res


# --------------------------- pure-JAX reference -------------------------------
def ref_forward(raw, x_cls, x_patch, which_blocks, scale: float = 1.0):
    out = {}
    for hname, branches in raw.items():
        xc, xp = 0.0, 0.0
        for j, _bix in enumerate(which_blocks):
            w1c, b1c, w2c, b2c = branches["cls"][j]
            w1p, b1p, w2p, b2p = branches["patch"][j]
            hc = jax.nn.gelu(jnp.dot(x_cls[_bix + 1], w1c, precision="highest") + b1c,
                             approximate=False)
            xc = xc + scale * (jnp.dot(hc, w2c, precision="highest") + b2c)
            hp = jax.nn.gelu(jnp.dot(x_patch[_bix + 1], w1p, precision="highest") + b1p,
                             approximate=False)
            xp = xp + scale * (jnp.dot(hp, w2p, precision="highest") + b2p)
        out[hname] = {"cls": xc, "patch": xp}
    return out


# ---------------------------------- main --------------------------------------
if __name__ == "__main__":
    # small synthetic configuration (two hidden-width segments, two heads)
    input_dim = 32
    hidden_dim = 64
    last_hidden_dim = 128
    n_encoder_blocks = 4
    which_blocks = list(range(n_encoder_blocks))
    head_dims = {"depth": 16, "normals": 24}
    B, P = 2, 8

    key = jax.random.PRNGKey(0)
    key, pkey = jax.random.split(key)
    raw = make_lp_raw_params(pkey, input_dim, head_dims, n_encoder_blocks,
                             which_blocks, hidden_dim, last_hidden_dim)
    fused = fuse_lp_params(raw, head_dims, which_blocks, n_encoder_blocks,
                           hidden_dim, last_hidden_dim)

    # inputs: lists of length n_encoder_blocks + 1 (index 0 unused, as in LP.forward)
    x_cls, x_patch = [], []
    for _ in range(n_encoder_blocks + 1):
        key, kc, kp = jax.random.split(key, 3)
        x_cls.append(jax.random.normal(kc, (B, input_dim), jnp.float32))
        x_patch.append(jax.random.normal(kp, (B, P, input_dim), jnp.float32))

    out = lp_forward(fused, x_cls, x_patch, which_blocks, scale=1.0)
    jax.block_until_ready(out)

    ref = ref_forward(raw, x_cls, x_patch, which_blocks, scale=1.0)
    for hname in head_dims:
        np.testing.assert_allclose(np.asarray(out[hname]["cls"]),
                                   np.asarray(ref[hname]["cls"]),
                                   rtol=2e-2, atol=2e-3)
        np.testing.assert_allclose(np.asarray(out[hname]["patch"]),
                                   np.asarray(ref[hname]["patch"]),
                                   rtol=2e-2, atol=2e-3)

    print("KERNEL_OK")
</pallas_src>

<mosaic_0001>
module attributes {stable_mosaic.version = 11 : i64} {
  func.func @_lp_seg_kernel(%arg0: i32, %arg1: i32, %arg2: memref<1x16x32xbf16, #tpu.memory_space<vmem>>, %arg3: memref<3x32x256xbf16, #tpu.memory_space<vmem>>, %arg4: memref<3x1x256xf32, #tpu.memory_space<vmem>>, %arg5: memref<6x128x128xbf16, #tpu.memory_space<vmem>>, %arg6: memref<6x1x128xf32, #tpu.memory_space<vmem>>, %arg7: memref<16x256xf32, #tpu.memory_space<vmem>>) attributes {dimension_semantics = [#tpu.dimension_semantics<parallel>, #tpu.dimension_semantics<arbitrary>], iteration_bounds = array<i64: 1, 3>, scalar_prefetch = 0 : i64, scratch_operands = 0 : i64, tpu.core_type = #tpu.core_type<tc>, window_params = [{transform_indices = @transform_0, window_bounds = array<i64: 1, 16, 32>}, {pipeline_mode = #tpu.pipeline_mode<synchronous>, transform_indices = @transform_1, window_bounds = array<i64: 3, 32, 256>}, {pipeline_mode = #tpu.pipeline_mode<synchronous>, transform_indices = @transform_2, window_bounds = array<i64: 3, 1, 256>}, {pipeline_mode = #tpu.pipeline_mode<synchronous>, transform_indices = @transform_3, window_bounds = array<i64: 6, 128, 128>}, {pipeline_mode = #tpu.pipeline_mode<synchronous>, transform_indices = @transform_4, window_bounds = array<i64: 6, 1, 128>}, {transform_indices = @transform_5, window_bounds = array<i64: 16, 256>}]} {
    %c0_i32 = arith.constant 0 : i32
    %0 = arith.cmpi eq, %arg1, %c0_i32 : i32
    %1 = arith.extui %0 : i1 to i32
    %c0_i32_0 = arith.constant 0 : i32
    %2 = arith.cmpi ne, %1, %c0_i32_0 : i32
    scf.if %2 {
      %cst_27 = arith.constant 0.000000e+00 : f32
      %56 = vector.broadcast %cst_27 : f32 to vector<16x256xf32>
      %c0_28 = arith.constant 0 : index
      %c0_29 = arith.constant 0 : index
      %57 = vector.load %arg7[%c0_28, %c0_29] : memref<16x256xf32, #tpu.memory_space<vmem>>, vector<16x256xf32>
      tpu.vector_store %arg7[%c0_28, %c0_29], %56 {strides = array<i32>} : memref<16x256xf32, #tpu.memory_space<vmem>>, vector<16x256xf32>,
    } else {
    }
    %c0 = arith.constant 0 : index
    %c0_1 = arith.constant 0 : index
    %c0_2 = arith.constant 0 : index
    %3 = vector.load %arg2[%c0, %c0_1, %c0_2] : memref<1x16x32xbf16, #tpu.memory_space<vmem>>, vector<1x16x32xbf16>
    %4 = vector.shape_cast %3 : vector<1x16x32xbf16> to vector<16x32xbf16>
    %5 = arith.index_cast %arg1 : i32 to index
    %c0_3 = arith.constant 0 : index
    %c0_4 = arith.constant 0 : index
    %6 = vector.load %arg3[%5, %c0_3, %c0_4] : memref<3x32x256xbf16, #tpu.memory_space<vmem>>, vector<1x32x256xbf16>
    %7 = vector.shape_cast %6 : vector<1x32x256xbf16> to vector<32x256xbf16>
    %cst = arith.constant dense<0.000000e+00> : vector<16x256xf32>
    %8 = tpu.matmul %4, %7, %cst {dimension_numbers = #tpu.dot_dimension_numbers<[1], [0], [0], [1], [0, 0, 1, 1], [], []>} : vector<16x32xbf16>, vector<32x256xbf16>, vector<16x256xf32> -> vector<16x256xf32>
    %9 = arith.index_cast %arg1 : i32 to index
    %c0_5 = arith.constant 0 : index
    %c0_6 = arith.constant 0 : index
    %10 = vector.load %arg4[%9, %c0_5, %c0_6] : memref<3x1x256xf32, #tpu.memory_space<vmem>>, vector<1x1x256xf32>
    %11 = vector.shape_cast %10 : vector<1x1x256xf32> to vector<1x256xf32>
    %12 = vector.broadcast %11 : vector<1x256xf32> to vector<16x256xf32>
    %13 = arith.addf %8, %12 : vector<16x256xf32>
    %14 = arith.mulf %13, %13 : vector<16x256xf32>
    %15 = arith.mulf %13, %14 : vector<16x256xf32>
    %cst_7 = arith.constant 4.471500e-02 : f32
    %16 = vector.broadcast %cst_7 : f32 to vector<16x256xf32>
    %17 = arith.mulf %16, %15 : vector<16x256xf32>
    %18 = arith.addf %13, %17 : vector<16x256xf32>
    %cst_8 = arith.constant 0.797884583 : f32
    %19 = vector.broadcast %cst_8 : f32 to vector<16x256xf32>
    %20 = arith.mulf %19, %18 : vector<16x256xf32>
    %21 = math.tanh %20 : vector<16x256xf32>
    %cst_9 = arith.constant 1.000000e+00 : f32
    %22 = vector.broadcast %cst_9 : f32 to vector<16x256xf32>
    %23 = arith.addf %22, %21 : vector<16x256xf32>
    %cst_10 = arith.constant 5.000000e-01 : f32
    %24 = vector.broadcast %cst_10 : f32 to vector<16x256xf32>
    %25 = arith.mulf %24, %23 : vector<16x256xf32>
    %26 = arith.mulf %13, %25 : vector<16x256xf32>
    %27 = arith.truncf %26 : vector<16x256xf32> to vector<16x256xbf16>
    %28 = vector.extract_strided_slice %27 {offsets = [0, 0], sizes = [16, 128], strides = [1, 1]} : vector<16x256xbf16> to vector<16x128xbf16>
    %c2_i32 = arith.constant 2 : i32
    %29 = arith.muli %arg1, %c2_i32 : i32
    %c0_i32_11 = arith.constant 0 : i32
    %30 = arith.addi %29, %c0_i32_11 : i32
    %31 = arith.index_cast %30 : i32 to index
    %c0_12 = arith.constant 0 : index
    %c0_13 = arith.constant 0 : index
    %32 = vector.load %arg5[%31, %c0_12, %c0_13] : memref<6x128x128xbf16, #tpu.memory_space<vmem>>, vector<1x128x128xbf16>
    %33 = vector.shape_cast %32 : vector<1x128x128xbf16> to vector<128x128xbf16>
    %cst_14 = arith.constant dense<0.000000e+00> : vector<16x128xf32>
    %34 = tpu.matmul %28, %33, %cst_14 {dimension_numbers = #tpu.dot_dimension_numbers<[1], [0], [0], [1], [0, 0, 1, 1], [], []>} : vector<16x128xbf16>, vector<128x128xbf16>, vector<16x128xf32> -> vector<16x128xf32>
    %35 = arith.index_cast %30 : i32 to index
    %c0_15 = arith.constant 0 : index
    %c0_16 = arith.constant 0 : index
    %36 = vector.load %arg6[%35, %c0_15, %c0_16] : memref<6x1x128xf32, #tpu.memory_space<vmem>>, vector<1x1x128xf32>
    %37 = vector.shape_cast %36 : vector<1x1x128xf32> to vector<1x128xf32>
    %38 = vector.broadcast %37 : vector<1x128xf32> to vector<16x128xf32>
    %39 = arith.addf %34, %38 : vector<16x128xf32>
    %40 = vector.extract_strided_slice %27 {offsets = [0, 128], sizes = [16, 128], strides = [1, 1]} : vector<16x256xbf16> to vector<16x128xbf16>
    %c2_i32_17 = arith.constant 2 : i32
    %41 = arith.muli %arg1, %c2_i32_17 : i32
    %c1_i32 = arith.constant 1 : i32
    %42 = arith.addi %41, %c1_i32 : i32
    %43 = arith.index_cast %42 : i32 to index
    %c0_18 = arith.constant 0 : index
    %c0_19 = arith.constant 0 : index
    %44 = vector.load %arg5[%43, %c0_18, %c0_19] : memref<6x128x128xbf16, #tpu.memory_space<vmem>>, vector<1x128x128xbf16>
    %45 = vector.shape_cast %44 : vector<1x128x128xbf16> to vector<128x128xbf16>
    %cst_20 = arith.constant dense<0.000000e+00> : vector<16x128xf32>
    %46 = tpu.matmul %40, %45, %cst_20 {dimension_numbers = #tpu.dot_dimension_numbers<[1], [0], [0], [1], [0, 0, 1, 1], [], []>} : vector<16x128xbf16>, vector<128x128xbf16>, vector<16x128xf32> -> vector<16x128xf32>
    %47 = arith.index_cast %42 : i32 to index
    %c0_21 = arith.constant 0 : index
    %c0_22 = arith.constant 0 : index
    %48 = vector.load %arg6[%47, %c0_21, %c0_22] : memref<6x1x128xf32, #tpu.memory_space<vmem>>, vector<1x1x128xf32>
    %49 = vector.shape_cast %48 : vector<1x1x128xf32> to vector<1x128xf32>
    %50 = vector.broadcast %49 : vector<1x128xf32> to vector<16x128xf32>
    %51 = arith.addf %46, %50 : vector<16x128xf32>
    %52 = tpu.concatenate %39, %51 in 1 : vector<16x128xf32>, vector<16x128xf32> -> vector<16x256xf32>
    %c0_23 = arith.constant 0 : index
    %c0_24 = arith.constant 0 : index
    %53 = vector.load %arg7[%c0_23, %c0_24] : memref<16x256xf32, #tpu.memory_space<vmem>>, vector<16x256xf32>
    %54 = arith.addf %53, %52 : vector<16x256xf32>
    %c0_25 = arith.constant 0 : index
    %c0_26 = arith.constant 0 : index
    %55 = vector.load %arg7[%c0_25, %c0_26] : memref<16x256xf32, #tpu.memory_space<vmem>>, vector<16x256xf32>
    tpu.vector_store %arg7[%c0_25, %c0_26], %54 {strides = array<i32>} : memref<16x256xf32, #tpu.memory_space<vmem>>, vector<16x256xf32>,
    return
  }
  func.func @transform_0(%arg0: i32, %arg1: i32) -> (i32, i32, i32) {
    %c0_i32 = arith.constant 0 : i32
    %c0_i32_0 = arith.constant 0 : i32
    return %arg1, %arg0, %c0_i32 : i32, i32, i32
  }
  func.func @transform_1(%arg0: i32, %arg1: i32) -> (i32, i32, i32) {
    %c0_i32 = arith.constant 0 : i32
    %c0_i32_0 = arith.constant 0 : i32
    %c0_i32_1 = arith.constant 0 : i32
    %c0_i32_2 = arith.constant 0 : i32
    return %c0_i32, %c0_i32_0, %c0_i32_1 : i32, i32, i32
  }
  func.func @transform_2(%arg0: i32, %arg1: i32) -> (i32, i32, i32) {
    %c0_i32 = arith.constant 0 : i32
    %c0_i32_0 = arith.constant 0 : i32
    %c0_i32_1 = arith.constant 0 : i32
    %c0_i32_2 = arith.constant 0 : i32
    return %c0_i32, %c0_i32_0, %c0_i32_1 : i32, i32, i32
  }
  func.func @transform_3(%arg0: i32, %arg1: i32) -> (i32, i32, i32) {
    %c0_i32 = arith.constant 0 : i32
    %c0_i32_0 = arith.constant 0 : i32
    %c0_i32_1 = arith.constant 0 : i32
    %c0_i32_2 = arith.constant 0 : i32
    return %c0_i32, %c0_i32_0, %c0_i32_1 : i32, i32, i32
  }
  func.func @transform_4(%arg0: i32, %arg1: i32) -> (i32, i32, i32) {
    %c0_i32 = arith.constant 0 : i32
    %c0_i32_0 = arith.constant 0 : i32
    %c0_i32_1 = arith.constant 0 : i32
    %c0_i32_2 = arith.constant 0 : i32
    return %c0_i32, %c0_i32_0, %c0_i32_1 : i32, i32, i32
  }
  func.func @transform_5(%arg0: i32, %arg1: i32) -> (i32, i32) {
    %c0_i32 = arith.constant 0 : i32
    %c0_i32_0 = arith.constant 0 : i32
    return %arg0, %c0_i32 : i32, i32
  }
}

</mosaic_0001>

<bundles_post_ra>
// kernel: tpu_custom_call.1
= control target key start
LH: loop header
LB: loop body
LE: loop exit
PB: predicated region body
PF: predicated region fallthrough
CT: control target
= control target key end

     0   :  { %10 = vsyncpa [#allocation3], 0  ;;  %s1507_s0 = inlined_call_operand.hbm [shape: bf16[3,16,32], index: 0, kind: input, shape index: {}]   ;;  %s1508_s1 = inlined_call_operand.hbm [shape: bf16[3,32,256], index: 1, kind: input, shape index: {}]   ;;  %s1509_s2 = inlined_call_operand.hbm [shape: f32[3,1,256], index: 2, kind: input, shape index: {}]   ;;  %s1510_s3 = inlined_call_operand.hbm [shape: bf16[6,128,128], index: 3, kind: input, shape index: {}]   ;;  %s1511_s4 = inlined_call_operand.vmem [shape: f32[6,1,128], index: 4, kind: input, shape index: {}]   ;;  %s1512_s5 = inlined_call_operand.hbm [shape: f32[16,256], index: 5, kind: output, shape index: {}]  }
   0x1   :  { %12 = vsyncpa [#allocation3 + $0x1], 0 }
   0x2   :  { %13 = vsyncpa [#allocation6], 0 }
   0x3   :  { %14 = vsyncpa [#allocation9], 0 }
   0x4   :  { %15 = vsyncpa [#allocation4], 0  ;;  %s1314_s18 = smov 0   ;;  %s1316_s19 = smov 0  }
   0x5   :  { %s1318_s20 = smov 0   ;;  %s1320_s21 = smov 0  }
   0x6   :  { %s1322_s22 = smov 0   ;;  %s1324_s23 = smov 0  }
   0x7 LB: > { %s1515_s24 = sadd.s32 4294967295, %s1265_s23   ;;  %p55_p0 = scmp.ne.s32.totalorder %s1249_s19, %s1245_s18  ;;  %s1265_s23 = sphi %s1324_s23, %s21_s23   ;;  %s1261_s22 = sphi %s1322_s22, %s1528_s22   ;;  %s1257_s21 = sphi %s1320_s21, %s1527_s21   ;;  %s1253_s20 = sphi %s1318_s20, %s1526_s20   ;;  %s1249_s19 = sphi %s1316_s19, %s1525_s19   ;;  %s1245_s18 = sphi %s1314_s18, %s1524_s18  }
   0x8   : > { %p1346_p1 = scmp.eq.s32.totalorder %s1515_s24, 0  ;;  %p807_p2 = scmp.ge.s32.totalorder %s1265_s23, 1 }
   0x9   : > { %p176_p3 = scmp.lt.s32.totalorder %s1265_s23, 4  ;;  %s1267_s28 = smov [#allocation5]  }
   0xa   : > { %s1516_s25 = scalar_select %p1346_p1, 1, 0 }
   0xb   : > { %p1354_p4 = por %p1346_p1, %p55_p0  ;;  %p1358_p5 = pnand %p807_p2, %p176_p3 }
   0xc   : > { %s188_s29 = sshll.u32 %s1267_s28, 4  ;;  %s1268_s6 = smov [#allocation7]   ;;  %s189_s29 = int_to_ptr.vmem [resolvable:$true] %s188_s29 }
   0xd   : > { %p955_p6 = pneg %p1358_p5  ;;  %s201_s7 = sshll.u32 %s1268_s6, 4  ;;  %s202_s7 = int_to_ptr.vmem [resolvable:$true] %s201_s7 }
   0xe   : > { %s1084_s8 = scalar_lea.vmem %s189_s29, 1536  ;;  %p1092_p12 = scmp.lt.s32.totalorder %s189_s29, %s189_s29 }
   0xf   : > { %p1366_p7 = pnand %p955_p6, %p1346_p1  ;;  %p1085_p9 = scmp.ne.s32.totalorder %s189_s29, %s1084_s8 }
  0x10   : > { %p1093_p13 = scmp.lt.s32.totalorder %s1084_s8, %s1084_s8 }
  0x11   : > { %p1075_p8 = pneg %p1366_p7 }
  0x12   : > { %p1094_p0 = por %p1093_p13, %p1092_p12 }
  0x13   : > { %p1087_p10 = pnand %p1085_p9, %p1075_p8 }
  0x15   : > { %p1088_p11 = pneg %p1087_p10 }
  0x17   : > { %p1095_p2 = pnand %p1094_p0, %p1088_p11 }
  0x19   : > { %1098 = shalt.err (!%p1095_p2)
}
  0x1a   : > { %s1269_s9 = smov 128   ;;  %s1270_s10 = smov 8  }
  0x1b   : > { %958 = dma.hbm_to_vmem [thread:$0]  (!%p1366_p7), %s1508_s1, 1536, %s189_s29, [#allocation6], %s1269_s9, %s1269_s9, %s1270_s10  }
  0x1c   : > { %s1110_s13 = scalar_lea.vmem %s202_s7, 96  ;;  %p1118_p10 = scmp.lt.s32.totalorder %s202_s7, %s202_s7 }
  0x1d   : > { %p1111_p3 = scmp.ne.s32.totalorder %s202_s7, %s1110_s13  ;;  %p1119_p1 = scmp.lt.s32.totalorder %s1110_s13, %s1110_s13 }
  0x1f   : > { %p1113_p6 = pnand %p1111_p3, %p1075_p8  ;;  %p1120_p12 = por %p1119_p1, %p1118_p10 }
  0x21   : > { %p1114_p9 = pneg %p1113_p6 }
  0x23   : > { %p1121_p11 = pnand %p1120_p12, %p1114_p9 }
  0x25   : > { %1124 = shalt.err (!%p1121_p11)
}
  0x26   : > { %s1271_s14 = smov 32   ;;  %s1272_s15 = smov 2  }
  0x27   : > { %961 = dma.hbm_to_vmem [thread:$0]  (!%p1366_p7), %s1509_s2, 96, %s202_s7, [#allocation6], %s1271_s14, %s1271_s14, %s1272_s15  }
  0x28   : > { %s1273_s18 = smov [#allocation8]  }
  0x29   : > { %s214_s28 = sshll.u32 %s1273_s18, 4  ;;  %s215_s28 = int_to_ptr.vmem [resolvable:$true] %s214_s28 }
  0x2a   : > { %s1136_s29 = scalar_lea.vmem %s215_s28, 6144  ;;  %p1144_p2 = scmp.lt.s32.totalorder %s215_s28, %s215_s28 }
  0x2b   : > { %p1137_p13 = scmp.ne.s32.totalorder %s215_s28, %s1136_s29  ;;  %p1145_p3 = scmp.lt.s32.totalorder %s1136_s29, %s1136_s29 }
  0x2d   : > { %p1139_p0 = pnand %p1137_p13, %p1075_p8  ;;  %p1146_p6 = por %p1145_p3, %p1144_p2 }
  0x2f   : > { %p1140_p1 = pneg %p1139_p0 }
  0x31   : > { %p1147_p9 = pnand %p1146_p6, %p1140_p1 }
  0x33   : > { %1150 = shalt.err (!%p1147_p9)
}
  0x34   : > { %s1274_s6 = smov 64   ;;  %s1275_s7 = smov 4  }
  0x35   : > { %964 = dma.hbm_to_vmem [thread:$0]  (!%p1366_p7), %s1510_s3, 6144, %s215_s28, [#allocation9], %s1274_s6, %s1274_s6, %s1275_s7  }
  0x36   : > { %s30_s10 = sadd.s32 1, %s1261_s22  ;;  %p49_p8 = scmp.ne.s32.totalorder %s1253_s20, %s1249_s19 }
  0x37   : > { %p31_p10 = scmp.ge.s32.totalorder %s30_s10, 3  ;;  %p50_p12 = scmp.eq.s32.totalorder %s1265_s23, 0 }
  0x38   : > { %s42_s11 = sadd.s32 1, %s1253_s20  ;;  %s231_s12 = sand.u32 1, %s1253_s20  }
  0x39   : > { %s1530_s10 = smov (%p31_p10, %s30_s10), 0  ;;  %p51_p11 = por %p50_p12, %p49_p8 }
  0x3a   : > { %p972_p13 = scmp.lt.s32.totalorder %s1265_s23, 3  ;;  %s37_s30 = ssub.s32 %s1261_s22, %s1530_s10 }
  0x3b   : > { %s812_s13 = sshll.u32 %s231_s12, 3  ;;  %p40_p0 = scmp.eq.s32.totalorder %s37_s30, 0 }
  0x3c   : > { %s874_s14 = sshll.u32 %s1261_s22, 7  ;;  %s235_s15 = scalar_lea.vmem [#allocation2], %s812_s13 }
  0x3d   : > { %s244_s16 = sshll.u32 %s235_s15, 4  ;;  %s243_s29 = scalar_lea.hbm %s1507_s0, %s874_s14  ;;  %s245_s16 = int_to_ptr.vmem [resolvable:$true] %s244_s16 }
  0x3e   : > { %s1412_s17 = scalar_select %p40_p0, %s1253_s20, %s42_s11  }
  0x3f   : > { %p1417_p7 = pnand %p972_p13, %p51_p11  ;;  %s232_s9 = scalar_lea.sflag [#allocation3], %s231_s12 }
  0x40   : > { %s1164_s24 = scalar_lea.vmem %s245_s16, 128  ;;  %s1276_s30 = smov [#allocation2]  }
  0x41   : > { %p1153_p1 = pneg %p1417_p7  ;;  %p1165_p2 = scmp.ne.s32.totalorder %s245_s16, %s1164_s24 }
  0x42   : > { %s1169_s11 = sshll.u32 %s1276_s30, 4  ;;  %s1170_s11 = int_to_ptr.vmem [resolvable:$false] %s1169_s11 }
  0x43   : > { %p1167_p3 = pnand %p1165_p2, %p1153_p1  ;;  %s1171_s13 = scalar_lea.vmem %s1170_s11, 256 }
  0x44   : > { %p1172_p9 = scmp.lt.s32.totalorder %s245_s16, %s1170_s11  ;;  %p1173_p8 = scmp.lt.s32.totalorder %s1171_s13, %s1164_s24 }
  0x45   : > { %p1168_p6 = pneg %p1167_p3 }
  0x46   : > { %p1174_p10 = por %p1173_p8, %p1172_p9 }
  0x48   : > { %p1175_p12 = pnand %p1174_p10, %p1168_p6 }
  0x4a   : > { %1178 = shalt.err (!%p1175_p12)
}
  0x4b   : > { %968 = dma.hbm_to_vmem [thread:$0]  (!%p1417_p7), %s243_s29, 128, %s245_s16, %s232_s9, %s1274_s6, %s1274_s6, %s1275_s7  }
  0x4c   : > { %256 = sbr.rel (%p1358_p5) target bundleno = 548 (0x224), region = 40  ;;  %s258_s12 = sand.u32 (!%p1358_p5), 1, %s1249_s19  }
  0x4d   : > { %s816_s14 = sshll.u32 (!%p1358_p5), %s258_s12, 3  ;;  %s259_s15 = scalar_lea.sflag (!%p1358_p5), [#allocation3], %s258_s12 }
  0x4e   : > { %s262_s18 = scalar_lea.vmem (!%p1358_p5), [#allocation2], %s816_s14 }
  0x51   : > { %1228 = dma.done.wait (%p1354_p4), %s259_s15, 128  }
  0x52   : > { %1230 = vsyncadd (%p1354_p4), %s259_s15, 4294967168  ;;  %p1521_p11 = scmp.ne.s32.totalorder %s1516_s25, 0 }
  0x54   : > { %1232 = dma.done.wait (%p1521_p11), [#allocation6], 1632  }
  0x55   : > { %1234 = vsyncadd (%p1521_p11), [#allocation6], 4294965664 }
  0x56   : > { %1236 = dma.done.wait (%p1521_p11), [#allocation9], 6144  }
  0x57   : > { %1238 = vsyncadd (%p1521_p11), [#allocation9], 4294961152  ;;  %p820_p5 = scmp.ne.s32.totalorder %s1257_s21, 0 }
  0x59   : > { %302 = sbr.rel (%p820_p5) target bundleno = 97 (0x61), region = 60 }
  0x5e   : > { %v1277_v0 = vmov 0.0  }
  0x5f   : > { %303 = vst [vmem:[#allocation10] sm:$0xff] %v1277_v0  ;;  %304 = vst [vmem:[#allocation10 + $0x8] sm:$0xff] %v1277_v0 }
  0x60   : > { %305 = vst [vmem:[#allocation10 + $0x10] sm:$0xff] %v1277_v0  ;;  %306 = vst [vmem:[#allocation10 + $0x18] sm:$0xff] %v1277_v0 }
  0x61 PF: > { %s875_s24 = sshll.u32 %s1257_s21, 5  ;;  %v1278_v1 = vmov 0   ;;  %v1048_v6 = vld [vmem:[%s262_s18] sm:$0xff]   ;;  %vm355_vm0 = vcmask 261120   ;;  %s877_s25 = sshll.u32 %s1257_s21, 7  ;;  %v1279_v8 = vmov 0.0   ;;  %v320_v24 = vlaneseq }
  0x62   : > { %391 = vmatprep.mubr.bf16.mxu0 %v1278_v1  ;;  %s311_s26 = scalar_lea.vmem [#allocation5], %s875_s24  ;;  %s1446_s27 = scalar_lea.vmem [#allocation8], %s877_s25  ;;  %897 = vmatprep.subr.bf16.mxu1 %v1279_v8  ;;  %vm1280_vm1 = vmmov 0  }
  0x63   : > { %v1042_v2 = vld [vmem:[%s311_s26 + $0x14] ss:$8 sps:$4 sm:$0xff]   ;;  %v1044_v3 = vld [vmem:[%s311_s26 + $0x10] ss:$8 sps:$4 sm:$0xff]   ;;  %v1045_v4 = vld [vmem:[%s311_s26 + $0x4] ss:$8 sps:$4 sm:$0xff]   ;;  %913 = vmatprep.mubr.msk.bf16.mxu1 %vm1280_vm1, %v1279_v8 }
  0x64   : > { %371 = vmatprep.subr.bf16.mxu0 %v1042_v2  ;;  %v1047_v5 = vld [vmem:[%s311_s26] ss:$8 sps:$4 sm:$0xff]   ;;  %v1049_v7 = vld [vmem:[%s1446_s27 + $0x38] sm:$0xff]   ;;  %v1051_v10 = vld [vmem:[%s1446_s27 + $0x30] sm:$0xff]   ;;  %s823_s6 = sshll.u32 %s1257_s21, 1  ;;  %v321_v25 = vshrl.u32 %v320_v24, 7 }
  0x65   : > { %372 = vmatpush1.bf16.msra.mxu0 %v1044_v3  ;;  %898 = vmatpush3.bf16.msra.mxu1 %v1049_v7  ;;  %v1050_v9 = vld [vmem:[%s1446_s27 + $0x78] sm:$0xff]   ;;  %v1052_v11 = vld [vmem:[%s1446_s27 + $0x70] sm:$0xff]   ;;  %v1053_v12 = vld [vmem:[%s1446_s27 + $0x28] sm:$0xff]   ;;  %s317_s7 = scalar_lea.vmem [#allocation7], %s823_s6  ;;  %s459_s29 = scalar_lea.vmem %s1511_s4, %s823_s6 }
  0x66   : > { %373 = vmatprep.subr.bf16.mxu0 %v1045_v4  ;;  %899 = vmatprep.subr.bf16.mxu1 %v1279_v8  ;;  %v1054_v13 = vld [vmem:[%s1446_s27 + $0x68] sm:$0xff]   ;;  %v1055_v14 = vld [vmem:[%s1446_s27 + $0x20] sm:$0xff]   ;;  %v1057_v16 = vld [vmem:[%s1446_s27 + $0x18] sm:$0xff]   ;;  %v322_v26 = vsub.s32 0, %v321_v25  ;;  %v326_v28 = vsub.s32 1, %v321_v25  ;;  %s1281_s21 = smov [#allocation10]  }
  0x67   : > { %v1056_v15 = vld [vmem:[%s1446_s27 + $0x60] sm:$0xff]   ;;  %v1058_v17 = vld [vmem:[%s1446_s27 + $0x58] sm:$0xff]   ;;  %v1059_v18 = vld [vmem:[%s1446_s27 + $0x10] sm:$0xff]   ;;  %s695_s8 = sshll.u32 %s1281_s21, 4  ;;  %s1522_s9 = sadd.s32 4294967295, %s1265_s23   ;;  %s696_s8 = int_to_ptr.vmem [resolvable:$true] %s695_s8 }
  0x68   : > { %v1060_v19 = vld [vmem:[%s1446_s27 + $0x50] sm:$0xff]   ;;  %v1061_v20 = vld [vmem:[%s1446_s27 + $0x8] sm:$0xff]   ;;  %v1063_v22 = vld [vmem:[%s1446_s27] sm:$0xff]   ;;  %p1474_p4 = scmp.eq.s32.totalorder %s1522_s9, 2  ;;  %s1179_s11 = scalar_lea.vmem %s696_s8, 512 }
  0x69   : > { %374 = vmatpush1.bf16.msra.mxu0 %v1047_v5  ;;  %900 = vmatpush3.bf16.msra.mxu1 %v1051_v10  ;;  %v1062_v21 = vld [vmem:[%s1446_s27 + $0x48] sm:$0xff]   ;;  %v1064_v23 = vld [vmem:[%s1446_s27 + $0x40] sm:$0xff]   ;;  %p1180_p13 = scmp.ne.s32.totalorder %s696_s8, %s1179_s11  ;;  %p1186_p1 = scmp.lt.s32.totalorder %s696_s8, %s696_s8 }
  0x6a   : > { %917 = vmatprep.subr.bf16.mxu0 %v1279_v8  ;;  %901 = vmatprep.subr.bf16.mxu1 %v1279_v8  ;;  %v318_v27 = vld [vmem:[%s317_s7] sm:$0x3]  ;;  %v675_v24 = vld [vmem:[#allocation10 + $0x10] sm:$0xff]  ;;  %p1187_p2 = scmp.lt.s32.totalorder %s1179_s11, %s1179_s11 }
  0x6b   : > { %v323_v29 = vrot.slane %v318_v27, %v322_v26  ;;  %v327_v30 = vrot.slane %v318_v27, %v326_v28  ;;  %p1181_p0 = pnand %p1180_p13, %p1474_p4 }
  0x6c   : > { %829 = vmatmul.mubr.msk.bf16.vlgmr.msra.gmra.mxu0 %vm355_vm0, %v1048_v6  ;;  %p1188_p3 = por %p1187_p2, %p1186_p1 }
  0x6d   : > { %918 = vmatpush3.bf16.msra.mxu0 %v1050_v9  ;;  %902 = vmatpush3.bf16.msra.mxu1 %v1053_v12  ;;  %p1182_p7 = pneg %p1181_p0 }
  0x6e   : > { %919 = vmatprep.subr.bf16.mxu0 %v1279_v8  ;;  %903 = vmatprep.subr.bf16.mxu1 %v1279_v8 }
  0x6f   : > { %933 = vmatprep.mubr.msk.bf16.mxu0 %vm1280_vm1, %v1279_v8  ;;  %p1189_p6 = pnand %p1188_p3, %p1182_p7 }
  0x71   : > { %920 = vmatpush3.bf16.msra.mxu0 %v1052_v11  ;;  %904 = vmatpush3.bf16.msra.mxu1 %v1055_v14 }
  0x72   : > { %921 = vmatprep.subr.bf16.mxu0 %v1279_v8  ;;  %905 = vmatprep.subr.bf16.mxu1 %v1279_v8 }
  0x75   : > { %922 = vmatpush3.bf16.msra.mxu0 %v1054_v13  ;;  %906 = vmatpush3.bf16.msra.mxu1 %v1057_v16  ;;  %v832_v13 = vld [vmem:[%s459_s29] ss:$0 sm:$0xff]  ;;  %v861_v16 = vld [vmem:[%s459_s29 + $0x1] ss:$0 sm:$0xff] }
  0x76   : > { %923 = vmatprep.subr.bf16.mxu0 %v1279_v8  ;;  %907 = vmatprep.subr.bf16.mxu1 %v1279_v8 }
  0x79   : > { %924 = vmatpush3.bf16.msra.mxu0 %v1056_v15  ;;  %908 = vmatpush3.bf16.msra.mxu1 %v1059_v18  ;;  %v673_v15 = vld [vmem:[#allocation10] sm:$0xff] }
  0x7a   : > { %925 = vmatprep.subr.bf16.mxu0 %v1279_v8  ;;  %909 = vmatprep.subr.bf16.mxu1 %v1279_v8 }
  0x7d   : > { %926 = vmatpush3.bf16.msra.mxu0 %v1058_v17  ;;  %910 = vmatpush3.bf16.msra.mxu1 %v1061_v20  ;;  %v674_v20 = vld [vmem:[#allocation10 + $0x8] sm:$0xff] }
  0x7e   : > { %927 = vmatprep.subr.bf16.mxu0 %v1279_v8  ;;  %911 = vmatprep.subr.bf16.mxu1 %v1279_v8 }
  0x81   : > { %928 = vmatpush3.bf16.msra.mxu0 %v1060_v19  ;;  %912 = vmatpush3.bf16.msra.mxu1 %v1063_v22 }
  0x82   : > { %929 = vmatprep.subr.bf16.mxu0 %v1279_v8 }
  0x85   : > { %930 = vmatpush3.bf16.msra.mxu0 %v1062_v21 }
  0x86   : > { %931 = vmatprep.subr.bf16.mxu0 %v1279_v8 }
  0x89   : > { %932 = vmatpush3.bf16.msra.mxu0 %v1064_v23 }
 0x12c   : > { %v393_v31 = vpop.f32.mrf.mxu0 }
 0x12d   : > { %v394_v32 = vadd.f32 %v393_v31, %v323_v29 }
 0x12e   : > { %v395_v33 = vpop.f32.mrf.mxu0 }
 0x12f   : > { %v402_v34 = vmul.f32 %v394_v32, %v394_v32  ;;  %v396_v35 = vadd.f32 %v395_v33, %v327_v30 }
 0x130   : > { %v397_v36 = vpop.f32.mrf.mxu0 }
 0x131   : > { %v406_v37 = vmul.f32 %v402_v34, %v394_v32  ;;  %v403_v38 = vmul.f32 %v396_v35, %v396_v35  ;;  %v398_v39 = vadd.f32 %v397_v36, %v323_v29 }
 0x132   : > { %v399_v40 = vpop.f32.mrf.mxu0 }
 0x133   : > { %v410_v41 = vmul.f32 0.044715, %v406_v37  ;;  %v407_v42 = vmul.f32 %v403_v38, %v396_v35  ;;  %v404_v43 = vmul.f32 %v398_v39, %v398_v39  ;;  %v400_v44 = vadd.f32 %v399_v40, %v327_v30  ;;  %v676_v30 = vld [vmem:[#allocation10 + $0x18] sm:$0xff] }
 0x135   : > { %v414_v45 = vadd.f32 %v410_v41, %v394_v32  ;;  %v411_v46 = vmul.f32 0.044715, %v407_v42  ;;  %v408_v47 = vmul.f32 %v404_v43, %v398_v39  ;;  %v405_v48 = vmul.f32 %v400_v44, %v400_v44 }
 0x137   : > { %v418_v49 = vmul.f32 0.7978846, %v414_v45  ;;  %v415_v50 = vadd.f32 %v411_v46, %v396_v35  ;;  %v412_v51 = vmul.f32 0.044715, %v408_v47  ;;  %v409_v52 = vmul.f32 %v405_v48, %v400_v44 }
 0x139   : > { %1065 = vtanh.f32 %v418_v49  ;;  %v419_v53 = vmul.f32 0.7978846, %v415_v50  ;;  %v416_v54 = vadd.f32 %v412_v51, %v398_v39  ;;  %v413_v55 = vmul.f32 0.044715, %v409_v52 }
 0x13b   : > { %1067 = vtanh.f32 %v419_v53  ;;  %v420_v56 = vmul.f32 0.7978846, %v416_v54  ;;  %v417_v57 = vadd.f32 %v413_v55, %v400_v44 }
 0x13d   : > { %1069 = vtanh.f32 %v420_v56  ;;  %v421_v58 = vmul.f32 0.7978846, %v417_v57 }
 0x13f   : > { %1071 = vtanh.f32 %v421_v58 }
 0x146   : > { %v1066_v59 = vpop.eup %1065 }
 0x147   : > { %v426_v60 = vadd.f32 1.0, %v1066_v59 }
 0x148   : > { %v1068_v61 = vpop.eup %1067 }
 0x149   : > { %v427_v62 = vadd.f32 1.0, %v1068_v61  ;;  %v430_v1 = vmul.f32 0.5, %v426_v60 }
 0x14a   : > { %v1070_v63 = vpop.eup %1069 }
 0x14b   : > { %v428_v0 = vadd.f32 1.0, %v1070_v63  ;;  %v431_v3 = vmul.f32 0.5, %v427_v62  ;;  %v434_v7 = vmul.f32 %v430_v1, %v394_v32 }
 0x14c   : > { %v1072_v2 = vpop.eup %1071 }
 0x14d   : > { %v429_v4 = vadd.f32 1.0, %v1072_v2  ;;  %v432_v5 = vmul.f32 0.5, %v428_v0  ;;  %v435_v9 = vmul.f32 %v431_v3, %v396_v35 }
 0x14f   : > { %v433_v6 = vmul.f32 0.5, %v429_v4  ;;  %v436_v8 = vmul.f32 %v432_v5, %v398_v39 }
 0x151   : > { %v437_v10 = vmul.f32 %v433_v6, %v400_v44  ;;  %v438_v11 = vpack.c.bf16 %v436_v8, %v434_v7 }
 0x153   : > { %914 = vmatmul.mubr.bf16.vlgmr.msra.gmra.mxu1 %v438_v11  ;;  %v439_v12 = vpack.c.bf16 %v437_v10, %v435_v9 }
 0x155   : > { %934 = vmatmul.mubr.bf16.vlgmr.msra.gmra.mxu0 %v439_v12 }
 0x213   : > { %v549_v14 = vpop.f32.mrf.mxu1 }
 0x214   : > { %v550_v17 = vadd.f32 %v832_v13, %v549_v14 }
 0x215   : > { %v915_v18 = vpop.f32.mrf.mxu1  ;;  %v666_v19 = vpop.f32.mrf.mxu0 }
 0x216   : > { %v677_v21 = vadd.f32 %v673_v15, %v550_v17  ;;  %v667_v22 = vadd.f32 %v861_v16, %v666_v19 }
 0x217   : > { %v552_v23 = vpop.f32.mrf.mxu1  ;;  %v935_v25 = vpop.f32.mrf.mxu0 }
 0x218   : > { %681 = vst [vmem:[#allocation10] sm:$0xff] %v677_v21  ;;  %v678_v26 = vadd.f32 %v674_v20, %v667_v22  ;;  %v553_v27 = vadd.f32 %v832_v13, %v552_v23 }
 0x219   : > { %v916_v28 = vpop.f32.mrf.mxu1  ;;  %v669_v29 = vpop.f32.mrf.mxu0 }
 0x21a   : > { %682 = vst [vmem:[#allocation10 + $0x8] sm:$0xff] %v678_v26  ;;  %v679_v31 = vadd.f32 %v675_v24, %v553_v27  ;;  %v670_v32 = vadd.f32 %v861_v16, %v669_v29 }
 0x21b   : > { %v936_v33 = vpop.f32.mrf.mxu0 }
 0x21c   : > { %683 = vst [vmem:[#allocation10 + $0x10] sm:$0xff] %v679_v31  ;;  %v680_v34 = vadd.f32 %v676_v30, %v670_v32 }
 0x21e   : > { %684 = vst [vmem:[#allocation10 + $0x18] sm:$0xff] %v680_v34 }
 0x21f   : > { %1192 = shalt.err (!%p1189_p6)
}
 0x220   : > { %s1282_s13 = smov 256   ;;  %s1283_s12 = smov 16  }
 0x221   : > { %952 = dma.vmem_to_hbm [thread:$0]  (%p1474_p4), %s696_s8, 512, %s1512_s5, [#allocation4], %s1282_s13, %s1282_s13, %s1283_s12  }
 0x222   : > { %1240 = dma.done.wait (%p1474_p4), [#allocation4], 512  }
 0x223   : > { %1242 = vsyncadd (%p1474_p4), [#allocation4], 4294966784 }
 0x224 PF: > { %s21_s23 = sadd.s32 1, %s1265_s23   ;;  %s1524_s18 = smov %s1249_s19 }
 0x225   : > { %p18_p9 = scmp.ge.s32.totalorder %s21_s23, 5   ;;  %s1525_s19 = smov %s1253_s20 }
 0x226   : > { %s1526_s20 = smov %s1412_s17  ;;  %s1527_s21 = smov %s1261_s22 }
 0x227   : > { %s1528_s22 = smov %s1530_s10  ;;  %20 = sbr.rel (!%p18_p9) target bundleno = 7 (0x7), region = 100 }
 0x22c   :  { %711 = vsyncpa [#allocation3], 1 }
 0x22d   :  { %713 = vsyncpa [#allocation3 + $0x1], 1 }
 0x22e   :  { %714 = vsyncpa [#allocation6], 1 }
 0x22f   :  { %715 = vsyncpa [#allocation9], 1 }
 0x230   :  { %716 = vsyncpa [#allocation4], 1 }
 0x231   :  { %718 = vsyncpa [#allocation4 + $0x1], 1 }

</bundles_post_ra>
